<compile_context>
chip_gen: v5e
topology: v5e:2x2
jax: 0.10.0
libtpu: 0.0.40
codegen_flags: <defaults>
</compile_context>

<pallas_src>
import jax
import jax.numpy as jnp
import numpy as np
from jax.experimental import pallas as pl
from jax.experimental.pallas import tpu as pltpu

_SUBLANE = 8
# Cap keeps (TB,128)+(TB,64) f32 intermediates + double-buffered x / out well
# inside v5e's 16 MiB default scoped VMEM without touching vmem_limit_bytes.
_MAX_TILE = 4096


def _round_up(n, m):
    return ((n + m - 1) // m) * m


def _dqn_kernel(x_ref, w1_ref, b1_ref, w2_ref, b2_ref, w3_ref, b3_ref, o_ref):
    # Whole forward pass fused per batch tile; weights stay VMEM-resident
    # across grid steps (constant index_map).  MXU accumulation is f32 even
    # when x / W are bf16; bias add + ReLU are done in f32 on the VPU.
    x = x_ref[...]                                                      # (TB, S)
    h1 = jnp.dot(x, w1_ref[...], preferred_element_type=jnp.float32)
    h1 = jnp.maximum(h1 + b1_ref[...], 0.0)                             # (TB, 128) f32
    h2 = jnp.dot(h1.astype(w2_ref.dtype), w2_ref[...],
                 preferred_element_type=jnp.float32)
    h2 = jnp.maximum(h2 + b2_ref[...], 0.0)                             # (TB, 64) f32
    q = jnp.dot(h2.astype(w3_ref.dtype), w3_ref[...],
                preferred_element_type=jnp.float32) + b3_ref[...]       # (TB, A)
    o_ref[...] = q.astype(o_ref.dtype)


def dqn_forward(x, params, *, tile_batch=_MAX_TILE, compute_dtype=jnp.float32):
    """Fused DQN forward. x: (B, state_size) -> (B, action_size) float32."""
    w1, b1, w2, b2, w3, b3 = params
    B, S = x.shape
    H1 = w1.shape[1]
    H2 = w2.shape[1]
    A = w3.shape[1]

    # --- Batch tile: sublane-aligned, VMEM-safe, >=2 grid steps if possible.
    tile_batch = _round_up(max(int(tile_batch), _SUBLANE), _SUBLANE)
    tile_batch = min(tile_batch, _MAX_TILE)
    # Prefer at least 2 grid steps so v7x's two TensorCores both get work; the
    # extra step costs ~0.35 us on single-TC chips (negligible).
    two_step_cap = max(_SUBLANE, _round_up(pl.cdiv(B, 2), _SUBLANE))
    tile_batch = min(tile_batch, two_step_cap)
    num_tiles = pl.cdiv(B, tile_batch)       # ragged edge handled by Pallas

    # --- Optional bf16 stream for x / weights; biases + accumulation in f32.
    xc = x.astype(compute_dtype)
    w1c = w1.astype(compute_dtype)
    w2c = w2.astype(compute_dtype)
    w3c = w3.astype(compute_dtype)
    b1f = b1.astype(jnp.float32)
    b2f = b2.astype(jnp.float32)
    b3f = b3.astype(jnp.float32)

    in_specs = [
        pl.BlockSpec((tile_batch, S), lambda i: (i, 0)),   # x (only B-scaling input)
        pl.BlockSpec((S, H1), lambda i: (0, 0)),           # W1 (resident)
        pl.BlockSpec((1, H1), lambda i: (0, 0)),           # b1
        pl.BlockSpec((H1, H2), lambda i: (0, 0)),          # W2
        pl.BlockSpec((1, H2), lambda i: (0, 0)),           # b2
        pl.BlockSpec((H2, A), lambda i: (0, 0)),           # W3 (unpadded)
        pl.BlockSpec((1, A), lambda i: (0, 0)),            # b3
    ]
    # Output last dim = A = full array dim -> legal block shape, 16 B/row store.
    out_spec = pl.BlockSpec((tile_batch, A), lambda i: (i, 0))

    itemsize = jnp.dtype(compute_dtype).itemsize
    flops = 2 * B * (S * H1 + H1 * H2 + H2 * A)
    bytes_accessed = (
        B * S * itemsize                              # x stream in
        + B * A * 4                                   # output (unpadded, f32)
        + (S * H1 + H1 * H2 + H2 * A) * itemsize      # weights (resident)
        + (H1 + H2 + A) * 4                           # biases
    )
    cost = pl.CostEstimate(flops=flops, transcendentals=0,
                           bytes_accessed=bytes_accessed)

    out = pl.pallas_call(
        _dqn_kernel,
        out_shape=jax.ShapeDtypeStruct((B, A), jnp.float32),
        grid_spec=pltpu.PrefetchScalarGridSpec(
            num_scalar_prefetch=0,
            grid=(num_tiles,),
            in_specs=in_specs,
            out_specs=out_spec,
        ),
        compiler_params=pltpu.CompilerParams(
            dimension_semantics=("parallel",),
        ),
        cost_estimate=cost,
    )(xc, w1c, b1f, w2c, b2f, w3c, b3f)

    return out


def init_dqn_params(key, state_size, action_size):
    """PyTorch nn.Linear-style init (U[-1/sqrt(fan_in), 1/sqrt(fan_in)]).
    Weights stored as (in_features, out_features)."""
    dims = [(state_size, 128), (128, 64), (64, action_size)]
    params = []
    for (fan_in, fan_out) in dims:
        key, kw, kb = jax.random.split(key, 3)
        bound = 1.0 / np.sqrt(fan_in)
        w = jax.random.uniform(kw, (fan_in, fan_out), jnp.float32, -bound, bound)
        b = jax.random.uniform(kb, (1, fan_out), jnp.float32, -bound, bound)
        params.extend([w, b])
    return tuple(params)


def dqn_reference(x, params):
    """Plain-JAX reference for correctness checking."""
    w1, b1, w2, b2, w3, b3 = params
    h1 = jnp.maximum(x @ w1 + b1, 0.0)
    h2 = jnp.maximum(h1 @ w2 + b2, 0.0)
    return h2 @ w3 + b3


if __name__ == "__main__":
    key = jax.random.PRNGKey(0)
    state_size = 16
    action_size = 4

    k_params, k_x, k_x2 = jax.random.split(key, 3)
    params = init_dqn_params(k_params, state_size, action_size)

    # 1) Small batch (single grid step), full f32 — strict tolerance.
    x_small = jax.random.normal(k_x, (8, state_size), dtype=jnp.float32)
    out_small = jax.block_until_ready(dqn_forward(x_small, params))
    assert out_small.shape == (8, action_size)
    np.testing.assert_allclose(np.asarray(out_small),
                               np.asarray(dqn_reference(x_small, params)),
                               rtol=1e-5, atol=1e-5)

    # 2) Ragged batch (1000 rows, tile 256 -> 4 grid steps, last block clipped).
    x_big = jax.random.normal(k_x2, (1000, state_size), dtype=jnp.float32)
    out_big = jax.block_until_ready(dqn_forward(x_big, params, tile_batch=256))
    assert out_big.shape == (1000, action_size)
    np.testing.assert_allclose(np.asarray(out_big),
                               np.asarray(dqn_reference(x_big, params)),
                               rtol=1e-5, atol=1e-5)

    # 3) Default (large) tile: capped so the grid still has 2 steps (v7x 2-TC).
    out_def = jax.block_until_ready(dqn_forward(x_big, params))
    np.testing.assert_allclose(np.asarray(out_def),
                               np.asarray(dqn_reference(x_big, params)),
                               rtol=1e-5, atol=1e-5)

    # 4) bf16 x / weight stream, f32 accumulation — loose tolerance.
    out_bf16 = jax.block_until_ready(
        dqn_forward(x_big, params, tile_batch=256, compute_dtype=jnp.bfloat16))
    np.testing.assert_allclose(np.asarray(out_bf16),
                               np.asarray(dqn_reference(x_big, params)),
                               rtol=5e-2, atol=5e-2)

    # TODO(synk): replay buffer / epsilon-greedy action selection / optimizer
    # step from the original agent are host-side training logic, not part of
    # the nn.Module forward, so they are intentionally not kernelized here.
    # (An in-kernel argmax variant emitting (B,1) int32 greedy actions would
    # cut output traffic another 4x if a consumer only needs actions.)
    print("KERNEL_OK")
</pallas_src>

<mosaic_0001>
module attributes {stable_mosaic.version = 11 : i64} {
  func.func @_dqn_kernel(%arg0: i32, %arg1: memref<8x16xf32, #tpu.memory_space<vmem>>, %arg2: memref<16x128xf32, #tpu.memory_space<vmem>>, %arg3: memref<1x128xf32, #tpu.memory_space<vmem>>, %arg4: memref<128x64xf32, #tpu.memory_space<vmem>>, %arg5: memref<1x64xf32, #tpu.memory_space<vmem>>, %arg6: memref<64x4xf32, #tpu.memory_space<vmem>>, %arg7: memref<1x4xf32, #tpu.memory_space<vmem>>, %arg8: memref<8x4xf32, #tpu.memory_space<vmem>>) attributes {dimension_semantics = [#tpu.dimension_semantics<parallel>], iteration_bounds = array<i64: 1>, scalar_prefetch = 0 : i64, scratch_operands = 0 : i64, tpu.core_type = #tpu.core_type<tc>, window_params = [{transform_indices = @transform_0, window_bounds = array<i64: 8, 16>}, {pipeline_mode = #tpu.pipeline_mode<synchronous>, transform_indices = @transform_1, window_bounds = array<i64: 16, 128>}, {pipeline_mode = #tpu.pipeline_mode<synchronous>, transform_indices = @transform_2, window_bounds = array<i64: 1, 128>}, {pipeline_mode = #tpu.pipeline_mode<synchronous>, transform_indices = @transform_3, window_bounds = array<i64: 128, 64>}, {pipeline_mode = #tpu.pipeline_mode<synchronous>, transform_indices = @transform_4, window_bounds = array<i64: 1, 64>}, {pipeline_mode = #tpu.pipeline_mode<synchronous>, transform_indices = @transform_5, window_bounds = array<i64: 64, 4>}, {pipeline_mode = #tpu.pipeline_mode<synchronous>, transform_indices = @transform_6, window_bounds = array<i64: 1, 4>}, {transform_indices = @transform_7, window_bounds = array<i64: 8, 4>}]} {
    %c0 = arith.constant 0 : index
    %c0_0 = arith.constant 0 : index
    %0 = vector.load %arg1[%c0, %c0_0] : memref<8x16xf32, #tpu.memory_space<vmem>>, vector<8x16xf32>
    %c0_1 = arith.constant 0 : index
    %c0_2 = arith.constant 0 : index
    %1 = vector.load %arg2[%c0_1, %c0_2] : memref<16x128xf32, #tpu.memory_space<vmem>>, vector<16x128xf32>
    %cst = arith.constant dense<0.000000e+00> : vector<8x128xf32>
    %2 = tpu.matmul %0, %1, %cst {dimension_numbers = #tpu.dot_dimension_numbers<[1], [0], [0], [1], [0, 0, 1, 1], [], []>} : vector<8x16xf32>, vector<16x128xf32>, vector<8x128xf32> -> vector<8x128xf32>
    %c0_3 = arith.constant 0 : index
    %c0_4 = arith.constant 0 : index
    %3 = vector.load %arg3[%c0_3, %c0_4] : memref<1x128xf32, #tpu.memory_space<vmem>>, vector<1x128xf32>
    %4 = vector.broadcast %3 : vector<1x128xf32> to vector<8x128xf32>
    %5 = arith.addf %2, %4 : vector<8x128xf32>
    %cst_5 = arith.constant 0.000000e+00 : f32
    %6 = vector.broadcast %cst_5 : f32 to vector<8x128xf32>
    %7 = arith.maximumf %5, %6 : vector<8x128xf32>
    %c0_6 = arith.constant 0 : index
    %c0_7 = arith.constant 0 : index
    %8 = vector.load %arg4[%c0_6, %c0_7] : memref<128x64xf32, #tpu.memory_space<vmem>>, vector<128x64xf32>
    %cst_8 = arith.constant dense<0.000000e+00> : vector<8x64xf32>
    %9 = tpu.matmul %7, %8, %cst_8 {dimension_numbers = #tpu.dot_dimension_numbers<[1], [0], [0], [1], [0, 0, 1, 1], [], []>} : vector<8x128xf32>, vector<128x64xf32>, vector<8x64xf32> -> vector<8x64xf32>
    %c0_9 = arith.constant 0 : index
    %c0_10 = arith.constant 0 : index
    %10 = vector.load %arg5[%c0_9, %c0_10] : memref<1x64xf32, #tpu.memory_space<vmem>>, vector<1x64xf32>
    %11 = vector.broadcast %10 : vector<1x64xf32> to vector<8x64xf32>
    %12 = arith.addf %9, %11 : vector<8x64xf32>
    %cst_11 = arith.constant 0.000000e+00 : f32
    %13 = vector.broadcast %cst_11 : f32 to vector<8x64xf32>
    %14 = arith.maximumf %12, %13 : vector<8x64xf32>
    %c0_12 = arith.constant 0 : index
    %c0_13 = arith.constant 0 : index
    %15 = vector.load %arg6[%c0_12, %c0_13] : memref<64x4xf32, #tpu.memory_space<vmem>>, vector<64x4xf32>
    %cst_14 = arith.constant dense<0.000000e+00> : vector<8x4xf32>
    %16 = tpu.matmul %14, %15, %cst_14 {dimension_numbers = #tpu.dot_dimension_numbers<[1], [0], [0], [1], [0, 0, 1, 1], [], []>} : vector<8x64xf32>, vector<64x4xf32>, vector<8x4xf32> -> vector<8x4xf32>
    %c0_15 = arith.constant 0 : index
    %c0_16 = arith.constant 0 : index
    %17 = vector.load %arg7[%c0_15, %c0_16] : memref<1x4xf32, #tpu.memory_space<vmem>>, vector<1x4xf32>
    %18 = vector.broadcast %17 : vector<1x4xf32> to vector<8x4xf32>
    %19 = arith.addf %16, %18 : vector<8x4xf32>
    %c0_17 = arith.constant 0 : index
    %c0_18 = arith.constant 0 : index
    %20 = vector.load %arg8[%c0_17, %c0_18] : memref<8x4xf32, #tpu.memory_space<vmem>>, vector<8x4xf32>
    tpu.vector_store %arg8[%c0_17, %c0_18], %19 {strides = array<i32>} : memref<8x4xf32, #tpu.memory_space<vmem>>, vector<8x4xf32>,
    return
  }
  func.func @transform_0(%arg0: i32) -> (i32, i32) {
    %c0_i32 = arith.constant 0 : i32
    %c0_i32_0 = arith.constant 0 : i32
    return %arg0, %c0_i32 : i32, i32
  }
  func.func @transform_1(%arg0: i32) -> (i32, i32) {
    %c0_i32 = arith.constant 0 : i32
    %c0_i32_0 = arith.constant 0 : i32
    %c0_i32_1 = arith.constant 0 : i32
    return %c0_i32, %c0_i32_0 : i32, i32
  }
  func.func @transform_2(%arg0: i32) -> (i32, i32) {
    %c0_i32 = arith.constant 0 : i32
    %c0_i32_0 = arith.constant 0 : i32
    %c0_i32_1 = arith.constant 0 : i32
    return %c0_i32, %c0_i32_0 : i32, i32
  }
  func.func @transform_3(%arg0: i32) -> (i32, i32) {
    %c0_i32 = arith.constant 0 : i32
    %c0_i32_0 = arith.constant 0 : i32
    %c0_i32_1 = arith.constant 0 : i32
    return %c0_i32, %c0_i32_0 : i32, i32
  }
  func.func @transform_4(%arg0: i32) -> (i32, i32) {
    %c0_i32 = arith.constant 0 : i32
    %c0_i32_0 = arith.constant 0 : i32
    %c0_i32_1 = arith.constant 0 : i32
    return %c0_i32, %c0_i32_0 : i32, i32
  }
  func.func @transform_5(%arg0: i32) -> (i32, i32) {
    %c0_i32 = arith.constant 0 : i32
    %c0_i32_0 = arith.constant 0 : i32
    %c0_i32_1 = arith.constant 0 : i32
    return %c0_i32, %c0_i32_0 : i32, i32
  }
  func.func @transform_6(%arg0: i32) -> (i32, i32) {
    %c0_i32 = arith.constant 0 : i32
    %c0_i32_0 = arith.constant 0 : i32
    %c0_i32_1 = arith.constant 0 : i32
    return %c0_i32, %c0_i32_0 : i32, i32
  }
  func.func @transform_7(%arg0: i32) -> (i32, i32) {
    %c0_i32 = arith.constant 0 : i32
    %c0_i32_0 = arith.constant 0 : i32
    return %arg0, %c0_i32 : i32, i32
  }
}

</mosaic_0001>

<bundles_post_ra>
// kernel: tpu_custom_call.1
= control target key start
LH: loop header
LB: loop body
LE: loop exit
PB: predicated region body
PF: predicated region fallthrough
CT: control target
= control target key end

     0   :  { %vm33_vm0 = vcmask 130048   ;;  %vm111_vm1 = vcmask 523264   ;;  %vm135_vm2 = vcmask 31744   ;;  %s279_s1 = inlined_call_operand.vmem [shape: f32[16,128], index: 1, kind: input, shape index: {}]   ;;  %s280_s0 = inlined_call_operand.vmem [shape: f32[8,16], index: 0, kind: input, shape index: {}]   ;;  %s281_s3 = inlined_call_operand.vmem [shape: f32[128,64], index: 3, kind: input, shape index: {}]   ;;  %s282_s2 = inlined_call_operand.vmem [shape: f32[1,128], index: 2, kind: input, shape index: {}]   ;;  %s283_s4 = inlined_call_operand.vmem [shape: f32[1,64], index: 4, kind: input, shape index: {}]   ;;  %s284_s5 = inlined_call_operand.vmem [shape: f32[64,4], index: 5, kind: input, shape index: {}]   ;;  %s285_s6 = inlined_call_operand.vmem [shape: f32[1,4], index: 6, kind: input, shape index: {}]   ;;  %s286_s7 = inlined_call_operand.vmem [shape: f32[8,4], index: 7, kind: output, shape index: {}]  }
   0x1   :  { %v28_v0 = vld [vmem:[%s279_s1 + $0x8] sm:$0xff]  ;;  %v27_v1 = vld [vmem:[%s279_s1] sm:$0xff]  ;;  %v73_v3 = vld [vmem:[%s281_s3 + $0x78] sm:$0xff] }
   0x2   :  { %51 = vmatpush.msra.mxu0 %v28_v0  ;;  %v26_v2 = vld [vmem:[%s280_s0] sm:$0xff]  ;;  %v72_v4 = vld [vmem:[%s281_s3 + $0x70] sm:$0xff]  ;;  %78 = vmatpush.msra.mxu1 %v73_v3  ;;  %v71_v5 = vld [vmem:[%s281_s3 + $0x68] sm:$0xff] }
   0x3   :  { %v70_v6 = vld [vmem:[%s281_s3 + $0x60] sm:$0xff]  ;;  %v69_v7 = vld [vmem:[%s281_s3 + $0x58] sm:$0xff]  ;;  %v68_v8 = vld [vmem:[%s281_s3 + $0x50] sm:$0xff] }
   0x4   :  { %52 = vmatpush.msra.mxu0 %v27_v1  ;;  %79 = vmatpush.msra.mxu1 %v72_v4  ;;  %v67_v9 = vld [vmem:[%s281_s3 + $0x48] sm:$0xff]  ;;  %v66_v10 = vld [vmem:[%s281_s3 + $0x40] sm:$0xff]  ;;  %v65_v11 = vld [vmem:[%s281_s3 + $0x38] sm:$0xff] }
   0x5   :  { %141 = vmatmul.msk.f32.vlgmr.msra.gmra.mxu0 %vm33_vm0, %v26_v2  ;;  %v64_v12 = vld [vmem:[%s281_s3 + $0x30] sm:$0xff]  ;;  %v63_v13 = vld [vmem:[%s281_s3 + $0x28] sm:$0xff]  ;;  %v62_v14 = vld [vmem:[%s281_s3 + $0x20] sm:$0xff] }
   0x6   :  { %80 = vmatpush.msra.mxu1 %v71_v5  ;;  %v61_v15 = vld [vmem:[%s281_s3 + $0x18] sm:$0xff]  ;;  %v60_v16 = vld [vmem:[%s281_s3 + $0x10] sm:$0xff]  ;;  %v59_v17 = vld [vmem:[%s281_s3 + $0x8] sm:$0xff] }
   0x7   :  { %v58_v18 = vld [vmem:[%s281_s3] sm:$0xff]  ;;  %v106_v19 = vld [vmem:[%s284_s5 + $0x38] sm:$0xff]  ;;  %v105_v20 = vld [vmem:[%s284_s5 + $0x30] sm:$0xff] }
   0x8   :  { %81 = vmatpush.msra.mxu1 %v70_v6  ;;  %123 = vmatpush.msra.mxu2 %v106_v19  ;;  %v104_v21 = vld [vmem:[%s284_s5 + $0x28] sm:$0xff]  ;;  %v103_v22 = vld [vmem:[%s284_s5 + $0x20] sm:$0xff]  ;;  %v102_v23 = vld [vmem:[%s284_s5 + $0x18] sm:$0xff] }
   0x9   :  { %v143_v24 = vld [vmem:[%s282_s2] ss:$0 sm:$0xff]  ;;  %v101_v28 = vld [vmem:[%s284_s5 + $0x10] sm:$0xff]  ;;  %v100_v29 = vld [vmem:[%s284_s5 + $0x8] sm:$0xff] }
   0xa   :  { %82 = vmatpush.msra.mxu1 %v69_v7  ;;  %124 = vmatpush.msra.mxu2 %v105_v20  ;;  %v99_v30 = vld [vmem:[%s284_s5] sm:$0xff] }
   0xb   :  { %v144_v31 = vld [vmem:[%s283_s4] ss:$0 sm:$0xff] }
   0xc   :  { %83 = vmatpush.msra.mxu1 %v68_v8  ;;  %125 = vmatpush.msra.mxu2 %v104_v21  ;;  %v145_v35 = vld [vmem:[%s285_s6] ss:$0 sm:$0xff] }
   0xe   :  { %84 = vmatpush.msra.mxu1 %v67_v9  ;;  %126 = vmatpush.msra.mxu2 %v103_v22 }
  0x10   :  { %85 = vmatpush.msra.mxu1 %v66_v10  ;;  %127 = vmatpush.msra.mxu2 %v102_v23 }
  0x12   :  { %86 = vmatpush.msra.mxu1 %v65_v11  ;;  %128 = vmatpush.msra.mxu2 %v101_v28 }
  0x14   :  { %87 = vmatpush.msra.mxu1 %v64_v12  ;;  %129 = vmatpush.msra.mxu2 %v100_v29 }
  0x16   :  { %88 = vmatpush.msra.mxu1 %v63_v13  ;;  %130 = vmatpush.msra.mxu2 %v99_v30 }
  0x18   :  { %89 = vmatpush.msra.mxu1 %v62_v14 }
  0x1a   :  { %90 = vmatpush.msra.mxu1 %v61_v15 }
  0x1c   :  { %91 = vmatpush.msra.mxu1 %v60_v16 }
  0x1e   :  { %92 = vmatpush.msra.mxu1 %v59_v17 }
  0x20   :  { %93 = vmatpush.msra.mxu1 %v58_v18 }
  0x82   :  { %v54_v25 = vpop.f32.mrf.mxu0 }
  0x83   :  { %v55_v26 = vadd.f32 %v143_v24, %v54_v25 }
  0x85   :  { %v57_v27 = vmax.f32 %v55_v26, 0.0 }
  0x87   :  { %94 = vmatmul.f32.vlgmr.msra.gmra.mxu1 %v57_v27 }
 0x104   :  { %v95_v32 = vpop.f32.mrf.mxu1 }
 0x105   :  { %v96_v33 = vadd.f32 %v144_v31, %v95_v32 }
 0x107   :  { %v98_v34 = vmax.f32 %v96_v33, 0.0 }
 0x109   :  { %142 = vmatmul.msk.f32.vlgmr.msra.gmra.mxu2 %vm111_vm1, %v98_v34 }
 0x18c   :  { %v132_v36 = vpop.f32.mrf.mxu2 }
 0x18d   :  { %v133_v37 = vadd.f32 %v145_v35, %v132_v36 }
 0x18f   :  { %136 = vst.msk [vmem:[%s286_s7] sm:$0xff] %vm135_vm2, %v133_v37 }

</bundles_post_ra>
